<compile_context>
chip_gen: v5e
topology: v5e:2x2
jax: 0.10.0
libtpu: 0.0.40
codegen_flags: <defaults>
</compile_context>

<pallas_src>
import functools
import math

import jax
import jax.numpy as jnp
import numpy as np
from jax.experimental import pallas as pl
from jax.experimental.pallas import tpu as pltpu

EPS = float(jnp.finfo(jnp.float32).eps)        # torch.nn.RMSNorm default eps
_INV_SQRT2 = 1.0 / math.sqrt(2.0)
_LANES = 128
_SUBLANES = 8


def _round_up(v: int, m: int) -> int:
    return ((v + m - 1) // m) * m


# ------------------------------ Pallas kernels ------------------------------
def _block_core(x, w1, b1, w2, b2, inv_f):
    """RMSNorm -> LCL1 (g folded) -> exact GELU -> LCL2 (gamma folded).

    f32 in / f32 out; MXU inputs cast to bf16 with f32 accumulation.
    """
    # RMSNorm over the *true* feature count: pad lanes are zero so they drop
    # out of the sum; divide by the real in_features, not the padded width.
    ssq = jnp.sum(x * x, axis=-1, keepdims=True)
    normed = x * jax.lax.rsqrt(ssq * inv_f + EPS)

    # fc_1: block-structured LCL as dense matmul (RMSNorm gain pre-folded into
    # the weight rows); bf16 MXU inputs, f32 accumulation.
    h = jnp.dot(normed.astype(w1.dtype), w1,
                preferred_element_type=jnp.float32) + b1
    # exact (erf) GELU, matching nn.GELU(approximate='none') semantics.
    h = 0.5 * h * (1.0 + jax.lax.erf(h * _INV_SQRT2))

    # fc_2 with LayerScale gamma pre-folded into weight + bias.
    return jnp.dot(h.astype(w2.dtype), w2,
                   preferred_element_type=jnp.float32) + b2


def _kernel_identity(x_ref, w1_ref, b1_ref, w2_ref, b2_ref, o_ref, *, inv_f):
    x = x_ref[...]
    out = _block_core(x, w1_ref[...], b1_ref[...],
                      w2_ref[...], b2_ref[...], inv_f)
    # in_features == out_features: residual is plain x (no downsample matmul,
    # no identity-matrix DMA).
    o_ref[...] = out + x


def _kernel_downsample(x_ref, w1_ref, b1_ref, w2_ref, b2_ref,
                       wd_ref, bd_ref, o_ref, *, inv_f):
    x = x_ref[...]
    out = _block_core(x, w1_ref[...], b1_ref[...],
                      w2_ref[...], b2_ref[...], inv_f)
    wd = wd_ref[...]
    ident = jnp.dot(x.astype(wd.dtype), wd,
                    preferred_element_type=jnp.float32) + bd_ref[...]
    o_ref[...] = out + ident


# -------------------------------- wrapper ------------------------------------
def lcl_residual_block(x, kp, *, tile_n=256):
    """Fused LCLResidualBlock forward.  x: (N, in_features) float32."""
    n, f = x.shape
    f_p, out1_p, out_p = kp["f_p"], kp["out1_p"], kp["out_p"]
    out_features = kp["out_features"]
    has_ds = kp["wd_dense"] is not None
    if not has_ds:
        assert f_p == out_p  # identity residual requires matching padded width

    tile_n = max(_SUBLANES, _round_up(min(tile_n, max(n, 1)), _SUBLANES))
    n_p = _round_up(n, tile_n)

    # Pad batch to a sublane multiple and features to a 128-lane multiple.
    x_p = jnp.pad(x.astype(jnp.float32), ((0, n_p - n), (0, f_p - f)))

    weight_args = [kp["w1_dense"], kp["b1"], kp["w2_dense"], kp["b2"]]
    if has_ds:
        weight_args += [kp["wd_dense"], kp["bd"]]

    def const_spec(a):  # resident across grid steps (constant block index)
        return pl.BlockSpec(a.shape, lambda i: (0,) * a.ndim)

    in_specs = [pl.BlockSpec((tile_n, f_p), lambda i: (i, 0))]
    in_specs += [const_spec(a) for a in weight_args]
    out_spec = pl.BlockSpec((tile_n, out_p), lambda i: (i, 0))

    kernel = functools.partial(
        _kernel_downsample if has_ds else _kernel_identity,
        inv_f=1.0 / float(f))

    # VMEM budget: resident weights + double-buffered activation tiles, with
    # 2x headroom, clamped well below v7x's 64 MiB per-TC capacity.
    resident = sum(int(a.size) * a.dtype.itemsize for a in weight_args)
    act_bytes = 2 * 2 * tile_n * (f_p + out_p) * 4
    vmem_limit = int(min(48 * 1024 * 1024,
                         max(4 * 1024 * 1024, 2 * (resident + act_bytes))))

    flops = 2 * n_p * (f_p * out1_p + out1_p * out_p)
    if has_ds:
        flops += 2 * n_p * f_p * out_p
    cost = pl.CostEstimate(
        flops=int(flops),
        transcendentals=int(n_p * out1_p),                     # erf in GELU
        bytes_accessed=int(x_p.size * 4 + n_p * out_p * 4 + resident))

    y = pl.pallas_call(
        kernel,
        out_shape=jax.ShapeDtypeStruct((n_p, out_p), jnp.float32),
        grid=(n_p // tile_n,),
        in_specs=in_specs,
        out_specs=out_spec,
        compiler_params=pltpu.CompilerParams(
            dimension_semantics=("parallel",),      # megacore on v7x
            vmem_limit_bytes=vmem_limit),
        cost_estimate=cost,
    )(x_p, *weight_args)

    return y[:n, :out_features]


# --------------------------- parameter setup (glue) --------------------------
def lcl_dense_weight(w_lcl, in_features):
    """(O, C, K) LCL weight -> equivalent dense (in_features, O*C) matrix so
    that x @ W == flatten(einsum('nhw,ohw->noh', reshape(pad(x)), w))."""
    o, c, k = w_lcl.shape
    wt = jnp.transpose(w_lcl, (1, 2, 0))                     # (C, K, O)
    eye = jnp.eye(c, dtype=w_lcl.dtype)
    dense = jnp.einsum("cko,cd->ckod", wt, eye).reshape(c * k, o * c)
    return dense[:in_features]           # rows past F would hit LCL zero-pad


def kaiming_uniform_3d(key, shape):
    # torch kaiming_uniform_(a=sqrt(5)) on a 3-D tensor -> bound = 1/sqrt(fan_in)
    fan_in = shape[1] * shape[2]
    bound = 1.0 / math.sqrt(fan_in)
    return jax.random.uniform(key, shape, jnp.float32, -bound, bound)


def _pad2d(a, rows, cols):
    return jnp.pad(a, ((0, rows - a.shape[0]), (0, cols - a.shape[1])))


def make_params(key, in_features, out_feature_sets, kernel_size):
    """Builds reference (PyTorch-layout) params plus the padded / bf16 dense
    params consumed by the Pallas kernel (with g / gamma folded in)."""
    c1 = math.ceil(in_features / kernel_size)       # fc_1: kernel_size given
    out1 = out_feature_sets * c1
    c2 = math.ceil(out1 / kernel_size)              # fc_2: reduce_both=True
    out2 = out_feature_sets * c2

    ks = jax.random.split(key, 8)
    w1_lcl = kaiming_uniform_3d(ks[0], (out_feature_sets, c1, kernel_size))
    w2_lcl = kaiming_uniform_3d(ks[1], (out_feature_sets, c2, kernel_size))
    # Randomize biases / norm weight / layer-scale (as-if trained) so the
    # numerical check exercises every term of the forward pass.
    g = jax.random.uniform(ks[2], (in_features,), jnp.float32, 0.5, 1.5)
    b1 = jax.random.uniform(ks[3], (out1,), jnp.float32, -0.1, 0.1)
    b2 = jax.random.uniform(ks[4], (out2,), jnp.float32, -0.1, 0.1)
    gamma = jax.random.uniform(ks[5], (out2,), jnp.float32, 0.5, 1.5)

    ref = {"g": g, "w1_lcl": w1_lcl, "b1": b1, "w2_lcl": w2_lcl, "b2": b2,
           "gamma": gamma, "wd_lcl": None, "bd": None}

    f_p = _round_up(in_features, _LANES)
    out1_p = _round_up(out1, _LANES)
    out_p = _round_up(out2, _LANES)

    # Exact f32 host-side folds (forward math unchanged):
    #   RMSNorm gain  -> scaled rows of fc_1 dense weight
    #   LayerScale    -> scaled cols of fc_2 dense weight + scaled bias
    w1_dense = lcl_dense_weight(w1_lcl, in_features) * g[:, None]
    w2_dense = lcl_dense_weight(w2_lcl, out1) * gamma[None, :]
    b2_fold = b2 * gamma

    kp = {
        "f_p": f_p, "out1_p": out1_p, "out_p": out_p, "out_features": out2,
        "w1_dense": _pad2d(w1_dense, f_p, out1_p).astype(jnp.bfloat16),
        "b1": _pad2d(b1[None, :], 1, out1_p),
        "w2_dense": _pad2d(w2_dense, out1_p, out_p).astype(jnp.bfloat16),
        "b2": _pad2d(b2_fold[None, :], 1, out_p),
        "wd_dense": None, "bd": None,
    }

    if in_features != out2:
        # downsample LCL: out_feature_sets=1, num_chunks = fc_2.out_features
        cd = out2
        kd = math.ceil(in_features / cd)
        wd_lcl = kaiming_uniform_3d(ks[6], (1, cd, kd))
        bd = jax.random.uniform(ks[7], (out2,), jnp.float32, -0.1, 0.1)
        ref["wd_lcl"], ref["bd"] = wd_lcl, bd
        kp["wd_dense"] = _pad2d(lcl_dense_weight(wd_lcl, in_features),
                                f_p, out_p).astype(jnp.bfloat16)
        kp["bd"] = _pad2d(bd[None, :], 1, out_p)

    return ref, kp, out2


# ----------------------------- pure-JAX reference ----------------------------
def lcl_ref(x, w_lcl, bias):
    o, c, k = w_lcl.shape
    pad = c * k - x.shape[1]
    xp = jnp.pad(x, ((0, 0), (0, pad)))
    xr = xp.reshape(x.shape[0], c, k)
    out = jnp.einsum("nhw,ohw->noh", xr, w_lcl).reshape(x.shape[0], o * c)
    return out + bias


def ref_forward(x, ref):
    ms = jnp.mean(x * x, axis=-1, keepdims=True)
    normed = x * jax.lax.rsqrt(ms + EPS) * ref["g"]
    if ref["wd_lcl"] is None:
        identity = x
    else:
        identity = lcl_ref(x, ref["wd_lcl"], ref["bd"])
    h = lcl_ref(normed, ref["w1_lcl"], ref["b1"])
    h = 0.5 * h * (1.0 + jax.lax.erf(h * _INV_SQRT2))
    out = lcl_ref(h, ref["w2_lcl"], ref["b2"]) * ref["gamma"]
    return out + identity


# ----------------------------------- main ------------------------------------
if __name__ == "__main__":
    key = jax.random.PRNGKey(0)
    # Two small configs to exercise both specialized kernels:
    #   (N, in_features, out_feature_sets, kernel_size)
    configs = [
        (16, 16, 2, 4),   # out_features=4  != 16 -> LCL downsample residual
        (16, 32, 4, 4),   # out_features=32 == 32 -> identity residual (no wd)
    ]
    for n, f, o_sets, ksz in configs:
        key, kparam, kx = jax.random.split(key, 3)
        ref_params, kern_params, out_features = make_params(kparam, f, o_sets, ksz)
        x = jax.random.normal(kx, (n, f), jnp.float32)

        y = jax.block_until_ready(lcl_residual_block(x, kern_params, tile_n=8))
        y_ref = jax.block_until_ready(ref_forward(x, ref_params))

        assert y.shape == (n, out_features)
        # Only deviation from the f32 reference is the deliberate bf16
        # quantization of the MXU inputs (f32 accumulation).
        np.testing.assert_allclose(np.asarray(y), np.asarray(y_ref),
                                   rtol=3e-2, atol=3e-2)

    print("KERNEL_OK")
</pallas_src>

<mosaic_0001>
module attributes {stable_mosaic.version = 11 : i64} {
  func.func @_kernel_downsample(%arg0: i32, %arg1: memref<8x128xf32, #tpu.memory_space<vmem>>, %arg2: memref<128x128xbf16, #tpu.memory_space<vmem>>, %arg3: memref<1x128xf32, #tpu.memory_space<vmem>>, %arg4: memref<128x128xbf16, #tpu.memory_space<vmem>>, %arg5: memref<1x128xf32, #tpu.memory_space<vmem>>, %arg6: memref<128x128xbf16, #tpu.memory_space<vmem>>, %arg7: memref<1x128xf32, #tpu.memory_space<vmem>>, %arg8: memref<8x128xf32, #tpu.memory_space<vmem>>) attributes {dimension_semantics = [#tpu.dimension_semantics<parallel>], iteration_bounds = array<i64: 2>, scalar_prefetch = 0 : i64, scratch_operands = 0 : i64, tpu.core_type = #tpu.core_type<tc>, window_params = [{transform_indices = @transform_0, window_bounds = array<i64: 8, 128>}, {pipeline_mode = #tpu.pipeline_mode<synchronous>, transform_indices = @transform_1, window_bounds = array<i64: 128, 128>}, {pipeline_mode = #tpu.pipeline_mode<synchronous>, transform_indices = @transform_2, window_bounds = array<i64: 1, 128>}, {pipeline_mode = #tpu.pipeline_mode<synchronous>, transform_indices = @transform_3, window_bounds = array<i64: 128, 128>}, {pipeline_mode = #tpu.pipeline_mode<synchronous>, transform_indices = @transform_4, window_bounds = array<i64: 1, 128>}, {pipeline_mode = #tpu.pipeline_mode<synchronous>, transform_indices = @transform_5, window_bounds = array<i64: 128, 128>}, {pipeline_mode = #tpu.pipeline_mode<synchronous>, transform_indices = @transform_6, window_bounds = array<i64: 1, 128>}, {transform_indices = @transform_7, window_bounds = array<i64: 8, 128>}]} {
    %c0 = arith.constant 0 : index
    %c0_0 = arith.constant 0 : index
    %0 = vector.load %arg1[%c0, %c0_0] : memref<8x128xf32, #tpu.memory_space<vmem>>, vector<8x128xf32>
    %c0_1 = arith.constant 0 : index
    %c0_2 = arith.constant 0 : index
    %1 = vector.load %arg2[%c0_1, %c0_2] : memref<128x128xbf16, #tpu.memory_space<vmem>>, vector<128x128xbf16>
    %c0_3 = arith.constant 0 : index
    %c0_4 = arith.constant 0 : index
    %2 = vector.load %arg3[%c0_3, %c0_4] : memref<1x128xf32, #tpu.memory_space<vmem>>, vector<1x128xf32>
    %c0_5 = arith.constant 0 : index
    %c0_6 = arith.constant 0 : index
    %3 = vector.load %arg4[%c0_5, %c0_6] : memref<128x128xbf16, #tpu.memory_space<vmem>>, vector<128x128xbf16>
    %c0_7 = arith.constant 0 : index
    %c0_8 = arith.constant 0 : index
    %4 = vector.load %arg5[%c0_7, %c0_8] : memref<1x128xf32, #tpu.memory_space<vmem>>, vector<1x128xf32>
    %5 = arith.mulf %0, %0 : vector<8x128xf32>
    %cst = arith.constant dense<0.000000e+00> : vector<8xf32>
    %6 = vector.multi_reduction <add>, %5, %cst [1] : vector<8x128xf32> to vector<8xf32>
    %7 = vector.shape_cast %6 : vector<8xf32> to vector<8x1xf32>
    %cst_9 = arith.constant 6.250000e-02 : f32
    %8 = vector.broadcast %cst_9 : f32 to vector<8x1xf32>
    %9 = arith.mulf %7, %8 : vector<8x1xf32>
    %cst_10 = arith.constant 1.1920929E-7 : f32
    %10 = vector.broadcast %cst_10 : f32 to vector<8x1xf32>
    %11 = arith.addf %9, %10 : vector<8x1xf32>
    %12 = math.rsqrt %11 : vector<8x1xf32>
    %13 = vector.broadcast %12 : vector<8x1xf32> to vector<8x128xf32>
    %14 = arith.mulf %0, %13 : vector<8x128xf32>
    %15 = arith.truncf %14 : vector<8x128xf32> to vector<8x128xbf16>
    %cst_11 = arith.constant dense<0.000000e+00> : vector<8x128xf32>
    %16 = tpu.matmul %15, %1, %cst_11 {dimension_numbers = #tpu.dot_dimension_numbers<[1], [0], [0], [1], [0, 0, 1, 1], [], []>} : vector<8x128xbf16>, vector<128x128xbf16>, vector<8x128xf32> -> vector<8x128xf32>
    %17 = vector.broadcast %2 : vector<1x128xf32> to vector<8x128xf32>
    %18 = arith.addf %16, %17 : vector<8x128xf32>
    %cst_12 = arith.constant 5.000000e-01 : f32
    %19 = vector.broadcast %cst_12 : f32 to vector<8x128xf32>
    %20 = arith.mulf %19, %18 : vector<8x128xf32>
    %cst_13 = arith.constant 0.707106769 : f32
    %21 = vector.broadcast %cst_13 : f32 to vector<8x128xf32>
    %22 = arith.mulf %18, %21 : vector<8x128xf32>
    %23 = math.erf %22 : vector<8x128xf32>
    %cst_14 = arith.constant 1.000000e+00 : f32
    %24 = vector.broadcast %cst_14 : f32 to vector<8x128xf32>
    %25 = arith.addf %24, %23 : vector<8x128xf32>
    %26 = arith.mulf %20, %25 : vector<8x128xf32>
    %27 = arith.truncf %26 : vector<8x128xf32> to vector<8x128xbf16>
    %cst_15 = arith.constant dense<0.000000e+00> : vector<8x128xf32>
    %28 = tpu.matmul %27, %3, %cst_15 {dimension_numbers = #tpu.dot_dimension_numbers<[1], [0], [0], [1], [0, 0, 1, 1], [], []>} : vector<8x128xbf16>, vector<128x128xbf16>, vector<8x128xf32> -> vector<8x128xf32>
    %29 = vector.broadcast %4 : vector<1x128xf32> to vector<8x128xf32>
    %30 = arith.addf %28, %29 : vector<8x128xf32>
    %c0_16 = arith.constant 0 : index
    %c0_17 = arith.constant 0 : index
    %31 = vector.load %arg6[%c0_16, %c0_17] : memref<128x128xbf16, #tpu.memory_space<vmem>>, vector<128x128xbf16>
    %32 = arith.truncf %0 : vector<8x128xf32> to vector<8x128xbf16>
    %cst_18 = arith.constant dense<0.000000e+00> : vector<8x128xf32>
    %33 = tpu.matmul %32, %31, %cst_18 {dimension_numbers = #tpu.dot_dimension_numbers<[1], [0], [0], [1], [0, 0, 1, 1], [], []>} : vector<8x128xbf16>, vector<128x128xbf16>, vector<8x128xf32> -> vector<8x128xf32>
    %c0_19 = arith.constant 0 : index
    %c0_20 = arith.constant 0 : index
    %34 = vector.load %arg7[%c0_19, %c0_20] : memref<1x128xf32, #tpu.memory_space<vmem>>, vector<1x128xf32>
    %35 = vector.broadcast %34 : vector<1x128xf32> to vector<8x128xf32>
    %36 = arith.addf %33, %35 : vector<8x128xf32>
    %37 = arith.addf %30, %36 : vector<8x128xf32>
    %c0_21 = arith.constant 0 : index
    %c0_22 = arith.constant 0 : index
    %38 = vector.load %arg8[%c0_21, %c0_22] : memref<8x128xf32, #tpu.memory_space<vmem>>, vector<8x128xf32>
    tpu.vector_store %arg8[%c0_21, %c0_22], %37 {strides = array<i32>} : memref<8x128xf32, #tpu.memory_space<vmem>>, vector<8x128xf32>,
    return
  }
  func.func @transform_0(%arg0: i32) -> (i32, i32) {
    %c0_i32 = arith.constant 0 : i32
    %c0_i32_0 = arith.constant 0 : i32
    return %arg0, %c0_i32 : i32, i32
  }
  func.func @transform_1(%arg0: i32) -> (i32, i32) {
    %c0_i32 = arith.constant 0 : i32
    %c0_i32_0 = arith.constant 0 : i32
    %c0_i32_1 = arith.constant 0 : i32
    return %c0_i32, %c0_i32_0 : i32, i32
  }
  func.func @transform_2(%arg0: i32) -> (i32, i32) {
    %c0_i32 = arith.constant 0 : i32
    %c0_i32_0 = arith.constant 0 : i32
    %c0_i32_1 = arith.constant 0 : i32
    return %c0_i32, %c0_i32_0 : i32, i32
  }
  func.func @transform_3(%arg0: i32) -> (i32, i32) {
    %c0_i32 = arith.constant 0 : i32
    %c0_i32_0 = arith.constant 0 : i32
    %c0_i32_1 = arith.constant 0 : i32
    return %c0_i32, %c0_i32_0 : i32, i32
  }
  func.func @transform_4(%arg0: i32) -> (i32, i32) {
    %c0_i32 = arith.constant 0 : i32
    %c0_i32_0 = arith.constant 0 : i32
    %c0_i32_1 = arith.constant 0 : i32
    return %c0_i32, %c0_i32_0 : i32, i32
  }
  func.func @transform_5(%arg0: i32) -> (i32, i32) {
    %c0_i32 = arith.constant 0 : i32
    %c0_i32_0 = arith.constant 0 : i32
    %c0_i32_1 = arith.constant 0 : i32
    return %c0_i32, %c0_i32_0 : i32, i32
  }
  func.func @transform_6(%arg0: i32) -> (i32, i32) {
    %c0_i32 = arith.constant 0 : i32
    %c0_i32_0 = arith.constant 0 : i32
    %c0_i32_1 = arith.constant 0 : i32
    return %c0_i32, %c0_i32_0 : i32, i32
  }
  func.func @transform_7(%arg0: i32) -> (i32, i32) {
    %c0_i32 = arith.constant 0 : i32
    %c0_i32_0 = arith.constant 0 : i32
    return %arg0, %c0_i32 : i32, i32
  }
}

</mosaic_0001>

<bundles_post_ra>
// kernel: tpu_custom_call.1
= control target key start
LH: loop header
LB: loop body
LE: loop exit
PB: predicated region body
PF: predicated region fallthrough
CT: control target
= control target key end

     0   :  { %s1412_s0 = inlined_call_operand.hbm [shape: f32[16,128], index: 0, kind: input, shape index: {}]   ;;  %s1413_s1 = inlined_call_operand.hbm [shape: bf16[128,128], index: 1, kind: input, shape index: {}]   ;;  %s1414_s2 = inlined_call_operand.vmem [shape: f32[1,128], index: 2, kind: input, shape index: {}]   ;;  %s1415_s3 = inlined_call_operand.hbm [shape: bf16[128,128], index: 3, kind: input, shape index: {}]   ;;  %s1416_s4 = inlined_call_operand.vmem [shape: f32[1,128], index: 4, kind: input, shape index: {}]   ;;  %s1417_s5 = inlined_call_operand.hbm [shape: bf16[128,128], index: 5, kind: input, shape index: {}]   ;;  %s1418_s6 = inlined_call_operand.vmem [shape: f32[1,128], index: 6, kind: input, shape index: {}]   ;;  %s1419_s7 = inlined_call_operand.hbm [shape: f32[16,128], index: 7, kind: output, shape index: {}]  }
   0x1   :  { %1420 = sst [smem:[#allocation15_spill]] %s1413_s1 }
   0x2   :  { %12 = vsyncpa [#allocation3], 0 }
   0x3   :  { %14 = vsyncpa [#allocation3 + $0x1], 0 }
   0x4   :  { %15 = vsyncpa [#allocation6], 0 }
   0x5   :  { %16 = vsyncpa [#allocation9], 0 }
   0x6   :  { %17 = vsyncpa [#allocation4], 0 }
   0x7   :  { %19 = vsyncpa [#allocation4 + $0x1], 0  ;;  %s1236_s24 = smov 0   ;;  %s1238_s25 = smov 0  }
   0x8   :  { %s1240_s26 = smov 0   ;;  %s1242_s27 = smov 0  }
   0x9 LB: > { %s1421_s1 = sld [smem:[#allocation15_spill]]  ;;  %s1260_s8 = sadd.s32 4294967295, %s1189_s27   ;;  %s1189_s27 = sphi %s1242_s27, %s1432_s27   ;;  %s1185_s26 = sphi %s1240_s26, %s1431_s26   ;;  %s1181_s25 = sphi %s1238_s25, %s1430_s25   ;;  %s1177_s24 = sphi %s1236_s24, %s1429_s24  }
   0xa   : > { %p771_p0 = scmp.ge.s32.totalorder %s1189_s27, 1  ;;  %p46_p1 = scmp.eq.s32.totalorder %s1260_s8, 0 }
   0xb   : > { %p208_p2 = scmp.lt.s32.totalorder %s1189_s27, 3  ;;  %s1191_s10 = smov [#allocation5]  }
   0xc   : > { %s221_s11 = sshll.u32 %s1191_s10, 4  ;;  %s236_s14 = sshll.u32 %s1415_s3, 4  ;;  %s222_s11 = int_to_ptr.vmem [resolvable:$true] %s221_s11  ;;  %s237_s14 = int_to_ptr.hbm [resolvable:$true] %s236_s14 }
   0xd   : > { %p1265_p3 = pnand %p771_p0, %p208_p2  ;;  %s253_s18 = sshll.u32 %s1417_s5, 4  ;;  %s254_s18 = int_to_ptr.hbm [resolvable:$true] %s253_s18 }
   0xe   : > { %s1192_s19 = smov [#allocation7]   ;;  %s1193_s21 = smov 64  }
   0xf   : > { %s219_s30 = sshll.u32 %s1421_s1, 4  ;;  %p925_p4 = pneg %p1265_p3  ;;  %s220_s30 = int_to_ptr.hbm [resolvable:$true] %s219_s30 }
  0x10   : > { %s238_s20 = sshll.u32 %s1192_s19, 4  ;;  %s1194_s22 = smov 4   ;;  %s239_s20 = int_to_ptr.vmem [resolvable:$true] %s238_s20 }
  0x11   : > { %p1277_p6 = pnand %p925_p4, %p46_p1  ;;  %s1195_s23 = smov [#allocation8]  }
  0x12   : > { %s255_s28 = sshll.u32 %s1195_s23, 4  ;;  %s770_s29 = sadd.s32 4294967294, %s1189_s27   ;;  %s256_s28 = int_to_ptr.vmem [resolvable:$true] %s255_s28 }
  0x13   : > { %928 = dma.hbm_to_vmem [thread:$0]  (!%p1277_p6), %s220_s30, 1024, %s222_s11, [#allocation6], %s1193_s21, %s1193_s21, %s1194_s22  }
  0x14   : > { %931 = dma.hbm_to_vmem [thread:$0]  (!%p1277_p6), %s237_s14, 1024, %s239_s20, [#allocation6], %s1193_s21, %s1193_s21, %s1194_s22  }
  0x15   : > { %934 = dma.hbm_to_vmem [thread:$0]  (!%p1277_p6), %s254_s18, 1024, %s256_s28, [#allocation9], %s1193_s21, %s1193_s21, %s1194_s22  }
  0x16   : > { %s1292_s10 = sadd.s32 1, %s1189_s27   ;;  %s32_s12 = sadd.s32 1, %s1185_s26 }
  0x17   : > { %s29_s30 = ssub.s32 %s1189_s27, %s1292_s10  ;;  %p39_p7 = scmp.ne.s32.totalorder %s1185_s26, %s1181_s25 }
  0x18   : > { %p30_p8 = scmp.eq.s32.totalorder %s29_s30, 0  ;;  %p40_p9 = scmp.eq.s32.totalorder %s1189_s27, 0 }
  0x19   : > { %p45_p10 = scmp.ne.s32.totalorder %s1181_s25, %s1177_s24  ;;  %p195_p11 = scmp.eq.s32.totalorder %s1260_s8, 1 }
  0x1a   : > { %s1304_s11 = scalar_select %p30_p8, %s1185_s26, %s32_s12  }
  0x1b   : > { %p1308_p12 = por %p46_p1, %p45_p10  ;;  %p1312_p13 = por %p195_p11, %p39_p7 }
  0x1c   : > { %p201_p0 = scmp.eq.s32.totalorder %s770_s29, 1  ;;  %p41_p2 = por %p40_p9, %p39_p7 }
  0x1d   : > { %s272_s15 = sand.u32 1, %s1185_s26   ;;  %p946_p6 = scmp.lt.s32.totalorder %s1189_s27, 2 }
  0x1e   : > { %p1317_p4 = por %p201_p0, %p45_p10  ;;  %s776_s17 = sshll.u32 %s272_s15, 3 }
  0x1f   : > { %s777_s18 = sshll.u32 %s1189_s27, 3  ;;  %s276_s23 = scalar_lea.vmem [#allocation2], %s776_s17 }
  0x20   : > { %s280_s21 = scalar_lea.hbm %s1412_s0, %s777_s18  ;;  %s284_s28 = sshll.u32 %s276_s23, 4  ;;  %s285_s28 = int_to_ptr.vmem [resolvable:$true] %s284_s28 }
  0x21   : > { %s282_s22 = sshll.u32 %s280_s21, 4  ;;  %p1326_p8 = pnand %p946_p6, %p41_p2  ;;  %s283_s22 = int_to_ptr.hbm [resolvable:$true] %s282_s22 }
  0x22   : > { %s273_s12 = scalar_lea.sflag [#allocation3], %s272_s15  ;;  %s1085_s30 = sshra.s32 %s283_s22, 4  ;;  %s1086_s30 = int_to_ptr.hbm [resolvable:$true] %s1085_s30 }
  0x23   : > { %s1087_s1 = scalar_lea.hbm %s1086_s30, 8  ;;  %p1089_p9 = pneg %p1326_p8 }
  0x24   : > { %p1088_p7 = scmp.ne.s32.totalorder %s1086_s30, %s1087_s1  ;;  %s1092_s17 = scalar_lea.hbm %s1412_s0, 16 }
  0x25   : > { %p1093_p0 = scmp.lt.s32.totalorder %s1086_s30, %s1412_s0  ;;  %p1094_p2 = scmp.lt.s32.totalorder %s1092_s17, %s1087_s1 }
  0x26   : > { %p1090_p10 = pnand %p1089_p9, %p1088_p7 }
  0x27   : > { %p1095_p6 = por %p1094_p2, %p1093_p0 }
  0x28   : > { %p1091_p11 = pneg %p1090_p10 }
  0x2a   : > { %p1096_p5 = pnand %p1095_p6, %p1091_p11 }
  0x2c   : > { %1099 = shalt.err (!%p1096_p5)
}
  0x2d   : > { %938 = dma.hbm_to_vmem [thread:$0]  (!%p1326_p8), %s283_s22, 128, %s285_s28, %s273_s12  }
  0x2e   : > { %293 = sbr.rel (%p1265_p3) target bundleno = 516 (0x204), region = 48  ;;  %s1343_s15 = sand.u32 (!%p1265_p3), 1, %s1181_s25  }
  0x2f   : > { %s779_s23 = sshll.u32 (!%p1265_p3), %s1343_s15, 3  ;;  %s296_s18 = scalar_lea.sflag (!%p1265_p3), [#allocation3], %s1343_s15 }
  0x30   : > { %s299_s1 = scalar_lea.vmem (!%p1265_p3), [#allocation2], %s779_s23 }
  0x33   : > { %1160 = dma.done.wait (%p1308_p12), %s296_s18, 128  }
  0x34   : > { %1162 = vsyncadd (%p1308_p12), %s296_s18, 4294967168 }
  0x35   : > { %1164 = dma.done.wait (%p46_p1), [#allocation6], 2048  }
  0x36   : > { %1166 = vsyncadd (%p46_p1), [#allocation6], 4294965248 }
  0x37   : > { %1168 = dma.done.wait (%p46_p1), [#allocation9], 1024  }
  0x38   : > { %1170 = vsyncadd (%p46_p1), [#allocation9], 4294966272  ;;  %v1361_v0 = vld [vmem:[%s299_s1] sm:$0xff]  ;;  %v890_v4 = vld [vmem:[#allocation5 + $0x28] sm:$0xff]  ;;  %s882_s22 = sshll.u32 %s1260_s8, 3  ;;  %s345_s21 = scalar_lea.vmem [#allocation10], %s779_s23 }
  0x39   : > { %v892_v1 = vld [vmem:[#allocation5 + $0x38] sm:$0xff]  ;;  %v381_v2 = vmul.f32 %v1361_v0, %v1361_v0  ;;  %v891_v3 = vld [vmem:[#allocation5 + $0x30] sm:$0xff]  ;;  %v889_v5 = vld [vmem:[#allocation5 + $0x20] sm:$0xff]  ;;  %v587_v40 = vpack.c.bf16 %v1361_v0, %v1361_v0  ;;  %s666_s20 = scalar_lea.hbm %s1419_s7, %s882_s22  ;;  %s668_s18 = sshll.u32 %s345_s21, 4  ;;  %s669_s18 = int_to_ptr.vmem [resolvable:$true] %s668_s18 }
  0x3a   : > { %449 = vmatpush.bf16.msra.mxu0 %v892_v1  ;;  %v888_v6 = vld [vmem:[#allocation5 + $0x18] sm:$0xff]  ;;  %v887_v7 = vld [vmem:[#allocation5 + $0x10] sm:$0xff]  ;;  %v886_v8 = vld [vmem:[#allocation5 + $0x8] sm:$0xff]  ;;  %s670_s1 = sshll.u32 %s666_s20, 4  ;;  %s656_s8 = scalar_lea.sflag [#allocation4], %s1343_s15  ;;  %s671_s1 = int_to_ptr.hbm [resolvable:$true] %s670_s1 }
  0x3b   : > { %382 = vadd.xlane.f32.xlu0 %v381_v2  ;;  %v885_v9 = vld [vmem:[#allocation5] sm:$0xff]  ;;  %v908_v22 = vld [vmem:[#allocation8 + $0x38] sm:$0xff]  ;;  %v907_v23 = vld [vmem:[#allocation8 + $0x30] sm:$0xff]  ;;  %s1129_s9 = sshra.s32 %s671_s1, 4  ;;  %s1135_s29 = scalar_lea.hbm %s1419_s7, 16  ;;  %s1130_s9 = int_to_ptr.hbm [resolvable:$true] %s1129_s9 }
  0x3c   : > { %640 = vmatpush.bf16.msra.mxu2 %v908_v22  ;;  %v906_v24 = vld [vmem:[#allocation8 + $0x28] sm:$0xff]  ;;  %v905_v25 = vld [vmem:[#allocation8 + $0x20] sm:$0xff]  ;;  %v900_v26 = vld [vmem:[#allocation7 + $0x38] sm:$0xff]  ;;  %s1131_s13 = scalar_lea.hbm %s1130_s9, 8  ;;  %p1136_p12 = scmp.lt.s32.totalorder %s1130_s9, %s1419_s7 }
  0x3d   : > { %558 = vmatpush.bf16.msra.mxu1 %v900_v26  ;;  %v904_v27 = vld [vmem:[#allocation8 + $0x18] sm:$0xff]  ;;  %v899_v28 = vld [vmem:[#allocation7 + $0x30] sm:$0xff]  ;;  %v898_v31 = vld [vmem:[#allocation7 + $0x28] sm:$0xff]  ;;  %p1132_p1 = scmp.ne.s32.totalorder %s1130_s9, %s1131_s13  ;;  %p1137_p8 = scmp.lt.s32.totalorder %s1135_s29, %s1131_s13 }
  0x3e   : > { %450 = vmatpush.bf16.msra.mxu0 %v891_v3  ;;  %v988_v29 = vld [vmem:[%s1414_s2] ss:$0 sm:$0xff]  ;;  %v902_v32 = vld [vmem:[#allocation8 + $0x8] sm:$0xff]  ;;  %v897_v35 = vld [vmem:[#allocation7 + $0x20] sm:$0xff] }
  0x3f   : > { %v903_v30 = vld [vmem:[#allocation8 + $0x10] sm:$0xff]  ;;  %v901_v37 = vld [vmem:[#allocation8] sm:$0xff]  ;;  %v896_v39 = vld [vmem:[#allocation7 + $0x18] sm:$0xff]  ;;  %p1133_p3 = pnand %p1132_p1, %p1312_p13  ;;  %p1138_p7 = por %p1137_p8, %p1136_p12 }
  0x40   : > { %641 = vmatpush.bf16.msra.mxu2 %v907_v23  ;;  %v895_v44 = vld [vmem:[#allocation7 + $0x10] sm:$0xff]  ;;  %v894_v49 = vld [vmem:[#allocation7 + $0x8] sm:$0xff]  ;;  %v893_v53 = vld [vmem:[#allocation7] sm:$0xff] }
  0x41   : > { %559 = vmatpush.bf16.msra.mxu1 %v899_v28  ;;  %v990_v22 = vld [vmem:[%s1416_s4] ss:$0 sm:$0xff]  ;;  %p1134_p5 = pneg %p1133_p3 }
  0x42   : > { %451 = vmatpush.bf16.msra.mxu0 %v890_v4 }
  0x43   : > { %p1139_p9 = pnand %p1138_p7, %p1134_p5 }
  0x44   : > { %642 = vmatpush.bf16.msra.mxu2 %v906_v24 }
  0x45   : > { %560 = vmatpush.bf16.msra.mxu1 %v898_v31 }
  0x46   : > { %452 = vmatpush.bf16.msra.mxu0 %v889_v5 }
  0x48   : > { %643 = vmatpush.bf16.msra.mxu2 %v905_v25 }
  0x49   : > { %561 = vmatpush.bf16.msra.mxu1 %v897_v35 }
  0x4a   : > { %453 = vmatpush.bf16.msra.mxu0 %v888_v6 }
  0x4c   : > { %644 = vmatpush.bf16.msra.mxu2 %v904_v27 }
  0x4d   : > { %562 = vmatpush.bf16.msra.mxu1 %v896_v39 }
  0x4e   : > { %454 = vmatpush.bf16.msra.mxu0 %v887_v7 }
  0x50   : > { %645 = vmatpush.bf16.msra.mxu2 %v903_v30 }
  0x51   : > { %563 = vmatpush.bf16.msra.mxu1 %v895_v44 }
  0x52   : > { %455 = vmatpush.bf16.msra.mxu0 %v886_v8 }
  0x54   : > { %646 = vmatpush.bf16.msra.mxu2 %v902_v32 }
  0x55   : > { %564 = vmatpush.bf16.msra.mxu1 %v894_v49 }
  0x56   : > { %456 = vmatpush.bf16.msra.mxu0 %v885_v9 }
  0x58   : > { %647 = vmatpush.bf16.msra.mxu2 %v901_v37 }
  0x59   : > { %565 = vmatpush.bf16.msra.mxu1 %v893_v53 }
  0x5b   : > { %648 = vmatmul.bf16.vlgmr.msra.gmra.mxu2 %v587_v40 }
  0xae   : > { %v383_v10 = vpop.xlane.xlu0 %382 }
  0xaf   : > { %v384_v11 = vmul.f32 0.0625, %v383_v10 }
  0xb1   : > { %v385_v12 = vadd.f32 1.1920929e-07, %v384_v11 }
  0xb3   : > { %991 = vrsqrt.f32 %v385_v12  ;;  %vm392_vm1 = vweird.f32 %v385_v12 }
  0xb9   : > { %v992_v13 = vpop.eup %991 }
  0xba   : > { %v387_v14 = vmul.f32 %v992_v13, %v385_v12  ;;  %vm393_vm0 = vweird.f32 %v992_v13 }
  0xbb   : > { %vm394_vm2 = vmor %vm392_vm1, %vm393_vm0 }
  0xbc   : > { %v388_v15 = vmul.f32 %v992_v13, %v387_v14 }
  0xbe   : > { %v389_v16 = vmul.f32 0.5, %v388_v15 }
  0xc0   : > { %v390_v17 = vsub.f32 1.5, %v389_v16 }
  0xc2   : > { %v391_v18 = vmul.f32 %v992_v13, %v390_v17 }
  0xc4   : > { %v395_v19 = vsel %vm394_vm2, %v992_v13, %v391_v18 }
  0xc5   : > { %v396_v20 = vmul.f32 %v395_v19, %v1361_v0 }
  0xc7   : > { %v397_v21 = vpack.c.bf16 %v396_v20, %v396_v20 }
  0xc9   : > { %457 = vmatmul.bf16.vlgmr.msra.gmra.mxu0 %v397_v21  ;;  %v989_v21 = vld [vmem:[%s1418_s6] ss:$0 sm:$0xff] }
  0xde   : > { %v649_v19 = vpop.f32.mrf.mxu2 }
  0xdf   : > { %v650_v23 = vadd.f32 %v989_v21, %v649_v19 }
  0xe6   : > { %v651_v20 = vpop.f32.mrf.mxu2 }
 0x146   : > { %v458_v33 = vpop.f32.mrf.mxu0 }
 0x147   : > { %v459_v34 = vadd.f32 %v988_v29, %v458_v33 }
 0x149   : > { %v463_v36 = vmul.f32 0.70710677, %v459_v34  ;;  %v462_v15 = vmul.f32 0.5, %v459_v34 }
 0x14b   : > { %v464_v38 = vmul.f32 %v463_v36, %v463_v36 }
 0x14d   : > { %v465_v41 = vmin.f32 %v464_v38, 16.0 }
 0x14e   : > { %v460_v42 = vpop.f32.mrf.mxu0 }
 0x14f   : > { %v466_v43 = vmul.f32 2.1237322e-06, %v465_v41  ;;  %v477_v45 = vmul.f32 3.8918573e-05, %v465_v41 }
 0x151   : > { %v467_v46 = vadd.f32 0.00028619796, %v466_v43  ;;  %v478_v47 = vadd.f32 0.001143296, %v477_v45 }
 0x153   : > { %v468_v48 = vmul.f32 %v467_v46, %v465_v41  ;;  %v479_v50 = vmul.f32 %v478_v47, %v465_v41 }
 0x155   : > { %v480_v51 = vadd.f32 0.014752088, %v479_v50  ;;  %v469_v52 = vadd.f32 0.0036580483, %v468_v48 }
 0x157   : > { %v481_v54 = vmul.f32 %v480_v51, %v465_v41  ;;  %v470_v56 = vmul.f32 %v469_v52, %v465_v41 }
 0x159   : > { %v482_v55 = vadd.f32 0.112945676, %v481_v54  ;;  %v471_v59 = vadd.f32 0.05243302, %v470_v56 }
 0x15b   : > { %v483_v57 = vmul.f32 %v482_v55, %v465_v41  ;;  %v472_v62 = vmul.f32 %v471_v59, %v465_v41 }
 0x15d   : > { %v484_v58 = vadd.f32 0.4994258, %v483_v57  ;;  %v473_v63 = vadd.f32 0.18741608, %v472_v62 }
 0x15f   : > { %v485_v60 = vmul.f32 %v484_v58, %v465_v41  ;;  %v474_v1 = vmul.f32 %v473_v63, %v465_v41 }
 0x161   : > { %v486_v61 = vadd.f32 1.0, %v485_v60  ;;  %v475_v5 = vadd.f32 1.1283791, %v474_v1 }
 0x163   : > { %993 = vrcp.f32 %v486_v61  ;;  %v498_v4 = vand.u32 2147483648, %v486_v61  ;;  %v496_v7 = vand.u32 2147483647, %v486_v61  ;;  %vm492_vm4 = vweird.f32 %v486_v61 }
 0x164   : > { %v476_v10 = vmul.f32 %v475_v5, %v463_v36 }
 0x165   : > { %v499_v9 = vor.u32 1.1754944e-38, %v498_v4  ;;  %vm497_vm6 = vcmp.eq.f32.partialorder %v496_v7, 8.507059e+37 }
 0x169   : > { %v994_v0 = vpop.eup %993 }
 0x16a   : > { %v488_v2 = vmul.f32 %v994_v0, %v486_v61  ;;  %vm493_vm3 = vweird.f32 %v994_v0 }
 0x16b   : > { %vm494_vm5 = vmor %vm492_vm4, %vm493_vm3 }
 0x16c   : > { %v489_v3 = vsub.f32 1.0, %v488_v2 }
 0x16e   : > { %v490_v6 = vmul.f32 %v994_v0, %v489_v3 }
 0x170   : > { %v491_v8 = vadd.f32 %v994_v0, %v490_v6 }
 0x172   : > { %v495_v11 = vsel %vm494_vm5, %v994_v0, %v491_v8 }
 0x173   : > { %v500_v12 = vsel %vm497_vm6, %v499_v9, %v495_v11 }
 0x174   : > { %v501_v13 = vmul.f32 %v500_v12, %v476_v10 }
 0x176   : > { %v816_v14 = vclamps-f32 %v501_v13, 1.0 }
 0x178   : > { %v504_v16 = vadd.f32 1.0, %v816_v14 }
 0x17a   : > { %v505_v17 = vmul.f32 %v504_v16, %v462_v15 }
 0x17c   : > { %v506_v18 = vpack.c.bf16 %v505_v17, %v505_v17 }
 0x17e   : > { %566 = vmatmul.bf16.vlgmr.msra.gmra.mxu1 %v506_v18 }
 0x1fb   : > { %v567_v24 = vpop.f32.mrf.mxu1 }
 0x1fc   : > { %v568_v25 = vadd.f32 %v990_v22, %v567_v24 }
 0x1fe   : > { %v653_v26 = vadd.f32 %v650_v23, %v568_v25 }
 0x200   : > { %654 = vst [vmem:[%s345_s21] sm:$0xff] %v653_v26 }
 0x201   : > { %1142 = shalt.err (!%p1139_p9)
}
 0x202   : > { %923 = dma.vmem_to_hbm [thread:$0]  (%p1312_p13), %s669_s18, 128, %s671_s1, %s656_s8  }
 0x203   : > { %v569_v27 = vpop.f32.mrf.mxu1 }
 0x204 PF: > { %s682_s15 = sand.u32 1, %s1177_s24   ;;  %p1428_p10 = scmp.ge.s32.totalorder %s1189_s27, 2 }
 0x205   : > { %s683_s30 = scalar_lea.sflag [#allocation4], %s682_s15 }
 0x206   : > { %p940_p11 = pnand %p1428_p10, %p1317_p4 }
 0x208   : > { %p941_p0 = pneg %p940_p11 }
 0x20a   : > { %1172 = dma.done.wait (%p941_p0), %s683_s30, 128  }
 0x20b   : > { %1174 = vsyncadd (%p941_p0), %s683_s30, 4294967168  ;;  %p22_p2 = scmp.ge.s32.totalorder %s1292_s10, 4   ;;  %s1429_s24 = smov %s1181_s25 }
 0x20c   : > { %s1430_s25 = smov %s1185_s26  ;;  %s1431_s26 = smov %s1304_s11 }
 0x20d   : > { %s1432_s27 = smov %s1292_s10  ;;  %24 = sbr.rel (!%p22_p2) target bundleno = 9 (0x9), region = 105 }
 0x212   :  { %689 = vsyncpa [#allocation3], 1 }
 0x213   :  { %691 = vsyncpa [#allocation3 + $0x1], 1 }
 0x214   :  { %692 = vsyncpa [#allocation6], 1 }
 0x215   :  { %693 = vsyncpa [#allocation9], 1 }
 0x216   :  { %694 = vsyncpa [#allocation4], 1 }
 0x217   :  { %696 = vsyncpa [#allocation4 + $0x1], 1 }

</bundles_post_ra>
